<compile_context>
chip_gen: v7x
topology: tpu7x:2x2x1
jax: 0.10.0
libtpu: 0.0.40
codegen_flags: <defaults>
</compile_context>

<pallas_src>
import jax
import jax.numpy as jnp
from jax import lax
from jax.experimental import pallas as pl
from jax.experimental.pallas import tpu as pltpu


_TIME_TILE_CANDIDATES = (1024, 512, 256, 128)   # output-time tile (lane dim)
_VMEM_TILE_BUDGET = 20 * 1024 * 1024            # conservative per-tile budget


def _make_kernel(*, taps, c_in, tt, halo_side):
    """Build the per-tile kernel.

    taps:      static tuple of (row_start, col_start) window offsets per tap.
    c_in:      rows contributed by each tap.
    tt:        output-time tile width (lane dim).
    halo_side: None (no halo input), 'left' or 'right' — where the small
               context slab sits relative to the main block inside the window.
    """

    def _compute(window, w_ref, b_ref, o_ref):
        pieces = [window[r:r + c_in, c:c + tt] for (r, c) in taps]
        slab = pieces[0] if len(pieces) == 1 else jnp.concatenate(pieces, axis=0)
        out = jnp.dot(w_ref[...], slab, preferred_element_type=jnp.float32)
        o_ref[0] = (out + b_ref[...]).astype(o_ref.dtype)

    if halo_side is None:
        def kernel(x_ref, w_ref, b_ref, o_ref):
            _compute(x_ref[0], w_ref, b_ref, o_ref)
    elif halo_side == "left":
        def kernel(h_ref, x_ref, w_ref, b_ref, o_ref):
            window = jnp.concatenate([h_ref[0, 0], x_ref[0]], axis=-1)
            _compute(window, w_ref, b_ref, o_ref)
    else:  # 'right'
        def kernel(h_ref, x_ref, w_ref, b_ref, o_ref):
            window = jnp.concatenate([x_ref[0], h_ref[0, 0]], axis=-1)
            _compute(window, w_ref, b_ref, o_ref)
    return kernel


def causal_conv1d(x, weight, bias, *, kernel_size, stride, dilation,
                  additional_context=0):
    """x: (N, C_in, T) NCW, weight: (C_out, C_in, K), bias: (C_out,).
    Returns (N, C_out, T_out) matching the PyTorch module's forward()."""
    K, s, d, ac = kernel_size, stride, dilation, additional_context
    n, c_in, t = x.shape
    c_out = weight.shape[0]

    padding = (K - 1) * d - s + 1
    if ac < 0:
        raise ValueError("additional_context must be non-negative")
    if ac > padding:
        raise ValueError("additional_context can't be greater than the padding")
    lp = padding - ac                      # causal left padding actually applied

    t_out = (t + lp - ((K - 1) * d + 1)) // s + 1
    if t_out <= 0:
        raise ValueError("sequence too short for this kernel configuration")

    itemsize = jnp.dtype(x.dtype).itemsize
    w_item = jnp.dtype(weight.dtype).itemsize

    if s == 1:
        rows = c_in
        halo_w = padding                               # (K-1)*d left context
        taps = tuple((0, k * d) for k in range(K))
        halo_side = "left" if halo_w > 0 else None
    else:
        # Phase decomposition: k*d = q_k*s + r_k, tap k reads phase r_k at +q_k.
        rows = s * c_in
        halo_w = ((K - 1) * d) // s                    # right context in phase cols
        taps = tuple((((k * d) % s) * c_in, (k * d) // s) for k in range(K))
        halo_side = "right" if halo_w > 0 else None

    def tile_bytes(tt_):
        win = tt_ + halo_w
        return (2 * rows * tt_ * itemsize              # main input (double-buffered)
                + 2 * rows * halo_w * itemsize         # halo side input
                + 2 * c_out * tt_ * itemsize           # output blocks
                + 2 * (c_out * K * c_in + c_out) * w_item
                + rows * win * itemsize                # in-kernel window copy
                + K * c_in * tt_ * itemsize            # tap slab
                + (K * c_in + c_out) * tt_ * 4)        # f32 slab / accum headroom

    # Pick the largest time tile (multiple of 128) that fits the VMEM budget.
    tt = None
    for cand in _TIME_TILE_CANDIDATES:
        if cand <= t_out and cand >= halo_w and tile_bytes(cand) <= _VMEM_TILE_BUDGET:
            tt = cand
            break
    if tt is None and t_out > 128 and halo_w <= 128:
        tt = 128                      # very wide channels: still tile the time axis
    if tt is None:
        tt = t_out                    # short sequence: single tile
    n_t = -(-t_out // tt)
    t_out_pad = n_t * tt

    if s == 1:
        # No full-tensor pad: tile 0's halo carries the lp zeros (+ the first
        # `ac` real samples); later tiles' halos are the previous block tails.
        x_main = x[:, :, ac:] if ac > 0 else x
        cur = t - ac
        need = t_out_pad
        if need > cur:
            x_main = jnp.pad(x_main, ((0, 0), (0, 0), (0, need - cur)))
        elif need < cur:
            x_main = x_main[:, :, :need]
        hs = None
        if halo_w > 0:
            parts = []
            if lp > 0:
                parts.append(jnp.zeros((n, c_in, lp), x.dtype))
            if ac > 0:
                parts.append(x[:, :, :ac])
            init = parts[0] if len(parts) == 1 else jnp.concatenate(parts, axis=-1)
            if n_t > 1:
                xb = x_main.reshape(n, c_in, n_t, tt)
                tails = xb[:, :, :-1, tt - halo_w:]            # (N,C_in,n_t-1,halo)
                hs = jnp.concatenate([init[:, :, None, :], tails], axis=2)
            else:
                hs = init[:, :, None, :]
            hs = jnp.transpose(hs, (0, 2, 1, 3))               # (N, n_t, rows, halo)
    else:
        # Strided path: build phase-major input once in HBM (wrapper-side).
        if halo_w > 0:
            l_ph = t_out_pad + (tt if n_t > 1 else halo_w)
        else:
            l_ph = t_out_pad
        l_xp = l_ph * s
        right = l_xp - (t + lp)
        xp = jnp.pad(x, ((0, 0), (0, 0), (lp, max(0, right))))
        if right < 0:
            xp = xp[:, :, :l_xp]
        xph = (xp.reshape(n, c_in, l_ph, s)
                 .transpose(0, 3, 1, 2)
                 .reshape(n, rows, l_ph))                      # row = r*C_in + ci
        x_main = xph[:, :, :t_out_pad]
        hs = None
        if halo_w > 0:
            if n_t > 1:
                hs = (xph[:, :, tt:(n_t + 1) * tt]
                      .reshape(n, rows, n_t, tt)[:, :, :, :halo_w])
            else:
                hs = xph[:, :, tt:tt + halo_w].reshape(n, rows, 1, halo_w)
            hs = jnp.transpose(hs, (0, 2, 1, 3))               # (N, n_t, rows, halo)

    # Taps fused into one contraction: (C_out, K*C_in), columns ordered (k, ci)
    # to match the slab built inside the kernel.  Bias as a (C_out, 1) column.
    w2 = jnp.transpose(weight, (0, 2, 1)).reshape(c_out, K * c_in)
    b2 = bias.reshape(c_out, 1).astype(jnp.float32)

    inputs = []
    in_specs = []
    if hs is not None:
        inputs.append(hs)
        in_specs.append(pl.BlockSpec((1, 1, rows, halo_w),
                                     lambda b, j: (b, j, 0, 0)))
    inputs += [x_main, w2, b2]
    in_specs += [
        pl.BlockSpec((1, rows, tt), lambda b, j: (b, 0, j)),
        pl.BlockSpec((c_out, K * c_in), lambda b, j: (0, 0)),
        pl.BlockSpec((c_out, 1), lambda b, j: (0, 0)),
    ]

    kernel = _make_kernel(taps=taps, c_in=c_in, tt=tt,
                          halo_side=halo_side if hs is not None else None)

    cost = pl.CostEstimate(
        flops=2 * n * t_out * c_out * K * c_in,
        transcendentals=0,
        bytes_accessed=int(x.size * itemsize
                           + weight.size * w_item
                           + bias.size * jnp.dtype(bias.dtype).itemsize
                           + n * c_out * t_out * itemsize))

    out_pad = pl.pallas_call(
        kernel,
        out_shape=jax.ShapeDtypeStruct((n, c_out, t_out_pad), x.dtype),
        grid_spec=pltpu.PrefetchScalarGridSpec(
            num_scalar_prefetch=0,
            grid=(n, n_t),
            in_specs=in_specs,
            out_specs=pl.BlockSpec((1, c_out, tt), lambda b, j: (b, 0, j)),
        ),
        compiler_params=pltpu.CompilerParams(
            dimension_semantics=("parallel", "parallel"),
            vmem_limit_bytes=32 * 1024 * 1024),
        cost_estimate=cost,
    )(*inputs)

    return out_pad if t_out_pad == t_out else out_pad[:, :, :t_out]


def _reference(x, weight, bias, *, kernel_size, stride, dilation,
               additional_context=0):
    """Pure-JAX reference matching the PyTorch module semantics."""
    padding = (kernel_size - 1) * dilation - stride + 1
    left_padding = padding - additional_context
    x_pad = jnp.pad(x, ((0, 0), (0, 0), (left_padding, 0)))
    out = lax.conv_general_dilated(
        x_pad, weight,
        window_strides=(stride,),
        padding="VALID",
        rhs_dilation=(dilation,),
        dimension_numbers=("NCH", "OIH", "NCH"),
        precision=lax.Precision.HIGHEST)
    return out + bias[None, :, None]


if __name__ == "__main__":
    def run_case(key, *, batch, c_in, c_out, k, s, d, ac, t):
        kx, kw, kb = jax.random.split(key, 3)
        fan_in = c_in * k
        bound = 1.0 / (fan_in ** 0.5)
        weight = jax.random.uniform(kw, (c_out, c_in, k), jnp.float32, -bound, bound)
        bias = jax.random.uniform(kb, (c_out,), jnp.float32, -bound, bound)
        x = jax.random.normal(kx, (batch, c_in, t), jnp.float32)

        out = causal_conv1d(x, weight, bias, kernel_size=k, stride=s,
                            dilation=d, additional_context=ac)
        out = jax.block_until_ready(out)
        ref = _reference(x, weight, bias, kernel_size=k, stride=s,
                         dilation=d, additional_context=ac)
        assert out.shape == ref.shape, (out.shape, ref.shape)
        err = float(jnp.max(jnp.abs(out - ref)))
        assert err < 1e-3, f"mismatch vs reference: max abs err {err}"

    key = jax.random.PRNGKey(0)
    k1, k2, k3 = jax.random.split(key, 3)

    # Case 1: module-default style config (small shapes, single-tile path).
    run_case(k1, batch=2, c_in=4, c_out=8, k=3, s=1, d=1, ac=0, t=16)

    # Case 2: dilation + additional_context, long enough to exercise the tiled
    # path (n_t > 1), per-tile halos, input right-pad and output slice.
    run_case(k2, batch=2, c_in=6, c_out=10, k=5, s=1, d=2, ac=1, t=1700)

    # Case 3: stride > 1 exercises the phase-decomposed strided path.
    run_case(k3, batch=2, c_in=4, c_out=8, k=3, s=2, d=2, ac=0, t=300)

    print("KERNEL_OK")
</pallas_src>

<mosaic_0001>
module attributes {stable_mosaic.version = 11 : i64} {
  func.func @kernel(%arg0: i32, %arg1: i32, %arg2: memref<1x1x4x2xf32, #tpu.memory_space<vmem>>, %arg3: memref<1x4x16xf32, #tpu.memory_space<vmem>>, %arg4: memref<8x12xf32, #tpu.memory_space<vmem>>, %arg5: memref<8x1xf32, #tpu.memory_space<vmem>>, %arg6: memref<1x8x16xf32, #tpu.memory_space<vmem>>) attributes {dimension_semantics = [#tpu.dimension_semantics<parallel>, #tpu.dimension_semantics<parallel>], iteration_bounds = array<i64: 2, 1>, scalar_prefetch = 0 : i64, scratch_operands = 0 : i64, tpu.core_type = #tpu.core_type<tc>, window_params = [{transform_indices = @transform_0, window_bounds = array<i64: 1, 1, 4, 2>}, {transform_indices = @transform_1, window_bounds = array<i64: 1, 4, 16>}, {pipeline_mode = #tpu.pipeline_mode<synchronous>, transform_indices = @transform_2, window_bounds = array<i64: 8, 12>}, {pipeline_mode = #tpu.pipeline_mode<synchronous>, transform_indices = @transform_3, window_bounds = array<i64: 8, 1>}, {transform_indices = @transform_4, window_bounds = array<i64: 1, 8, 16>}]} {
    %c0 = arith.constant 0 : index
    %c0_0 = arith.constant 0 : index
    %c0_1 = arith.constant 0 : index
    %c0_2 = arith.constant 0 : index
    %0 = vector.load %arg2[%c0, %c0_0, %c0_1, %c0_2] : memref<1x1x4x2xf32, #tpu.memory_space<vmem>>, vector<1x1x4x2xf32>
    %1 = vector.shape_cast %0 : vector<1x1x4x2xf32> to vector<4x2xf32>
    %c0_3 = arith.constant 0 : index
    %c0_4 = arith.constant 0 : index
    %c0_5 = arith.constant 0 : index
    %2 = vector.load %arg3[%c0_3, %c0_4, %c0_5] : memref<1x4x16xf32, #tpu.memory_space<vmem>>, vector<1x4x16xf32>
    %3 = vector.shape_cast %2 : vector<1x4x16xf32> to vector<4x16xf32>
    %4 = tpu.concatenate %1, %3 in 1 : vector<4x2xf32>, vector<4x16xf32> -> vector<4x18xf32>
    %5 = vector.extract_strided_slice %4 {offsets = [0, 0], sizes = [4, 16], strides = [1, 1]} : vector<4x18xf32> to vector<4x16xf32>
    %6 = vector.extract_strided_slice %4 {offsets = [0, 1], sizes = [4, 16], strides = [1, 1]} : vector<4x18xf32> to vector<4x16xf32>
    %7 = vector.extract_strided_slice %4 {offsets = [0, 2], sizes = [4, 16], strides = [1, 1]} : vector<4x18xf32> to vector<4x16xf32>
    %8 = tpu.concatenate %5, %6, %7 in 0 : vector<4x16xf32>, vector<4x16xf32>, vector<4x16xf32> -> vector<12x16xf32>
    %c0_6 = arith.constant 0 : index
    %c0_7 = arith.constant 0 : index
    %9 = vector.load %arg4[%c0_6, %c0_7] : memref<8x12xf32, #tpu.memory_space<vmem>>, vector<8x12xf32>
    %cst = arith.constant dense<0.000000e+00> : vector<8x16xf32>
    %10 = tpu.matmul %9, %8, %cst {dimension_numbers = #tpu.dot_dimension_numbers<[1], [0], [0], [1], [0, 0, 1, 1], [], []>} : vector<8x12xf32>, vector<12x16xf32>, vector<8x16xf32> -> vector<8x16xf32>
    %c0_8 = arith.constant 0 : index
    %c0_9 = arith.constant 0 : index
    %11 = vector.load %arg5[%c0_8, %c0_9] : memref<8x1xf32, #tpu.memory_space<vmem>>, vector<8x1xf32>
    %12 = vector.broadcast %11 : vector<8x1xf32> to vector<8x16xf32>
    %13 = arith.addf %10, %12 : vector<8x16xf32>
    %c0_10 = arith.constant 0 : index
    %c0_11 = arith.constant 0 : index
    %c0_12 = arith.constant 0 : index
    %14 = vector.load %arg6[%c0_10, %c0_11, %c0_12] : memref<1x8x16xf32, #tpu.memory_space<vmem>>, vector<1x8x16xf32>
    %15 = vector.shape_cast %14 : vector<1x8x16xf32> to vector<8x16xf32>
    %16 = vector.shape_cast %13 : vector<8x16xf32> to vector<1x8x16xf32>
    tpu.vector_store %arg6[%c0_10, %c0_11, %c0_12], %16 {strides = array<i32>} : memref<1x8x16xf32, #tpu.memory_space<vmem>>, vector<1x8x16xf32>,
    return
  }
  func.func @transform_0(%arg0: i32, %arg1: i32) -> (i32, i32, i32, i32) {
    %c0_i32 = arith.constant 0 : i32
    %c0_i32_0 = arith.constant 0 : i32
    %c0_i32_1 = arith.constant 0 : i32
    return %arg0, %arg1, %c0_i32, %c0_i32_0 : i32, i32, i32, i32
  }
  func.func @transform_1(%arg0: i32, %arg1: i32) -> (i32, i32, i32) {
    %c0_i32 = arith.constant 0 : i32
    %c0_i32_0 = arith.constant 0 : i32
    return %arg0, %c0_i32, %arg1 : i32, i32, i32
  }
  func.func @transform_2(%arg0: i32, %arg1: i32) -> (i32, i32) {
    %c0_i32 = arith.constant 0 : i32
    %c0_i32_0 = arith.constant 0 : i32
    %c0_i32_1 = arith.constant 0 : i32
    return %c0_i32, %c0_i32_0 : i32, i32
  }
  func.func @transform_3(%arg0: i32, %arg1: i32) -> (i32, i32) {
    %c0_i32 = arith.constant 0 : i32
    %c0_i32_0 = arith.constant 0 : i32
    %c0_i32_1 = arith.constant 0 : i32
    return %c0_i32, %c0_i32_0 : i32, i32
  }
  func.func @transform_4(%arg0: i32, %arg1: i32) -> (i32, i32, i32) {
    %c0_i32 = arith.constant 0 : i32
    %c0_i32_0 = arith.constant 0 : i32
    return %arg0, %c0_i32, %arg1 : i32, i32, i32
  }
}

</mosaic_0001>

<bundles_post_ra>
// kernel: tpu_custom_call.1
= control target key start
LH: loop header
LB: loop body
LE: loop exit
PB: predicated region body
PF: predicated region fallthrough
CT: control target
= control target key end

     0   :  { %9 = vsyncpa [#allocation3], 0  ;;  %s777_s0 = inlined_call_operand.vmem [shape: f32[2,1,4,2], index: 0, kind: input, shape index: {}]   ;;  %s778_s1 = inlined_call_operand.vmem [shape: f32[2,4,16], index: 1, kind: input, shape index: {}]   ;;  %s779_s2 = inlined_call_operand.vmem [shape: f32[8,12], index: 2, kind: input, shape index: {}]   ;;  %s780_s3 = inlined_call_operand.vmem [shape: f32[8,1], index: 3, kind: input, shape index: {}]   ;;  %s781_s4 = inlined_call_operand.hbm [shape: f32[2,8,16], index: 4, kind: output, shape index: {}]  }
   0x1   :  { %11 = vsyncpa [#allocation3 + $0x1], 0  ;;  %s656_s15 = smov 0   ;;  %s658_s16 = smov 0  }
   0x2   :  { %s660_s17 = smov 0   ;;  %s662_s18 = smov 0  }
   0x3   :  { %s664_s19 = smov 0   ;;  %s666_s20 = smov 0  }
   0x4 LB: > { %s449_s21 = sadd.s32 4294967295, %s620_s20   ;;  %s450_s22 = sadd.s32 4294967294, %s620_s20   ;;  %s620_s20 = sphi %s666_s20, %s17_s20   ;;  %s616_s19 = sphi %s664_s19, %s788_s19   ;;  %s612_s18 = sphi %s662_s18, %s787_s18   ;;  %s608_s17 = sphi %s660_s17, %s786_s17   ;;  %s604_s16 = sphi %s658_s16, %s785_s16   ;;  %s600_s15 = sphi %s656_s15, %s784_s15  }
   0x5   : > { %s29_s23 = sadd.s32 1, %s616_s19  ;;  %s136_s24 = sadd.s32 1, %s608_s17 }
   0x6   : > { %p31_p0 = scmp.ge.s32.totalorder %s29_s23, 2  ;;  %p146_p1 = scmp.ne.s32.totalorder %s608_s17, %s604_s16 }
   0x7   : > { %p147_p2 = scmp.eq.s32.totalorder %s449_s21, 1  ;;  %p152_p3 = scmp.ne.s32.totalorder %s604_s16, %s600_s15 }
   0x8   : > { %s790_s23 = smov (%p31_p0, %s29_s23), 0  ;;  %p153_p5 = scmp.eq.s32.totalorder %s450_s22, 1 }
   0x9   : > { %p696_p4 = por %p147_p2, %p146_p1  ;;  %s131_s26 = ssub.s32 %s616_s19, %s790_s23 }
   0xa   : > { %p453_p6 = scmp.ge.s32.totalorder %s620_s20, 1  ;;  %p134_p7 = scmp.eq.s32.totalorder %s131_s26, 0 }
   0xb   : > { %p703_p8 = por %p153_p5, %p152_p3  ;;  %p197_p9 = scmp.lt.s32.totalorder %s620_s20, 3 }
   0xc   : > { %s709_s28 = scalar_select %p134_p7, %s608_s17, %s136_s24  }
   0xd   : > { %p198_p10 = pnand %p453_p6, %p197_p9 }
   0xe   : > { %p232_p11 = scmp.lt.s32.totalorder (!%p198_p10), %s612_s18, 1  ;;  %s622_s8 = smov (!%p198_p10), 2   ;;  %v623_v1 = vmov (!%p198_p10), 0.0|0.0   ;;  %vm624_vm0 = vmmov (!%p198_p10), 0   ;;  %v625_v2 = vmov (!%p198_p10), 0.0   ;;  %vm252_vm1 = vcmask (!%p198_p10), 15360  }
   0xf   : > { %201 = sbr.rel (%p198_p10) target bundleno = 494 (0x1ee), region = 36  ;;  %473 = vmatprep.subr.bf16.mxu0 (!%p198_p10), %v623_v1  ;;  %470 = vmatprep.mubr.msk.f32.mxu0 (!%p198_p10), %vm624_vm0, %v625_v2  ;;  %v626_v4 = vmov (!%p198_p10), 0   ;;  %s627_s12 = smov (!%p198_p10), 126   ;;  %v264_v8 = vld [vmem:[%s780_s3] sm:$0xff] (!%p198_p10)  ;;  %vm261_vm2 = vcmask (!%p198_p10), 1043456   ;;  %vm629_vm3 = vmmov (!%p198_p10), 1  }
  0x10   : > { %540 = vset.pattern.permute.xlu1 (!%p198_p10), %v626_v4  ;;  %541 = vset.pattern.permute.xlu0 (!%p198_p10), %v626_v4  ;;  %s628_s21 = smov (!%p198_p10), 127   ;;  %vm475_vm4 = vmpackc.low (!%p198_p10), %vm261_vm2, %vm629_vm3  ;;  %v263_v13 = vld [vmem:[%s779_s2] sm:$0xff] (!%p198_p10)  ;;  %vm270_vm5 = vcmask (!%p198_p10), 97280   ;;  %s229_s26 = sand.u32 (!%p198_p10), 1, %s604_s16   ;;  %vm346_vm6 = vcmask (!%p198_p10), 130048  }
  0x11   : > { %s349_s10 = scalar_lea.sflag (!%p198_p10), [#allocation3], %s229_s26 }
  0x16   : > { %s233_s29 = scalar_select %p232_p11, %s612_s18, 1 }
  0x18   : > { %s455_s30 = sshll.u32 %s233_s29, 2  ;;  %s454_s29 = sshll.u32 %s229_s26, 3 }
  0x19   : > { %s245_s7 = scalar_lea.vmem %s778_s1, %s455_s30  ;;  %s238_s11 = scalar_lea.vmem %s777_s0, %s455_s30 }
  0x1a   : > { %v247_v0 = vld [vmem:[%s245_s7] sm:$0xf]  ;;  %s460_s30 = sshll.u32 %s612_s18, 7  ;;  %s231_s5 = scalar_lea.vmem [#allocation2], %s454_s29 }
  0x1b   : > { %249 = vrot.lane.b32.xlu0 %v247_v0, %s622_s8  ;;  %v246_v3 = vld [vmem:[%s238_s11] sm:$0xf]  ;;  %s363_s6 = sshll.u32 %s231_s5, 4  ;;  %s730_s9 = scalar_lea.hbm %s781_s4, %s460_s30  ;;  %s732_s6 = int_to_ptr.vmem [resolvable:$true] %s363_s6 }
  0x1c   : > { %s542_s11 = scalar_lea.vmem %s732_s6, 128  ;;  %s630_s18 = smov [#allocation2]  }
  0x1d   : > { %p543_p12 = scmp.ne.s32.totalorder %s732_s6, %s542_s11 }
  0x1f   : > { %p544_p13 = pnand %p543_p12, %p696_p4 }
  0x21   : > { %p545_p0 = pneg %p544_p13 }
  0x8d   : > { %v250_v5 = vpop.permute.xlu0 %249 }
  0x8e   : > { %v253_v6 = vsel %vm252_vm1, %v246_v3, %v250_v5 }
  0x8f   : > { %259 = vrot.lane.b32.xlu1 %v253_v6, %s627_s12  ;;  %v255_v7 = vrot.slane %v253_v6, 4  ;;  %s546_s12 = sshll.u32 %s630_s18, 4  ;;  %s547_s12 = int_to_ptr.vmem [resolvable:$false] %s546_s12 }
  0x90   : > { %s548_s13 = scalar_lea.vmem %s547_s12, 256  ;;  %p549_p1 = scmp.lt.s32.totalorder %s732_s6, %s547_s12 }
  0x91   : > { %256 = vrot.lane.b32.xlu0 %v255_v7, %s628_s21  ;;  %p550_p2 = scmp.lt.s32.totalorder %s548_s13, %s542_s11 }
  0x93   : > { %267 = vperm.xlu1 %540, %v264_v8   ;;  %p551_p3 = por %p550_p2, %p549_p1 }
  0x95   : > { %p552_p5 = pnand %p551_p3, %p545_p0 }
 0x101   : > { %v260_v10 = vpop.permute.xlu1 %259 }
 0x103   : > { %v257_v9 = vpop.permute.xlu0 %256 }
 0x104   : > { %v262_v11 = vsel %vm261_vm2, %v253_v6, %v257_v9 }
 0x105   : > { %v474_v12 = vpack.c.bf16 %v260_v10, %v262_v11 }
 0x107   : > { %476 = vmatpush3.bf16.msk.msra.mxu0 %vm475_vm4, %v474_v12 }
 0x10a   : > { %471 = vmatmul.mubr.msk.f32.vlgmr.msra.gmra.mrb[0].mxu0 %vm270_vm5, %v263_v13 }
 0x112   : > { %v268_v14 = vpop.permute.xlu1 %267 }
 0x1dd   : > { %v342_v15 = vpop.f32.mrb[0].mxu0 }
 0x1de   : > { %v343_v16 = vadd.f32 %v342_v15, %v268_v14  ;;  %v472_v17 = vpop.f32.mrb[1].mxu0 }
 0x1e0   : > { %347 = vst.msk [vmem:[%s231_s5] sm:$0xff] %vm346_vm6, %v343_v16 }
 0x1e1   : > { %555 = shalt.err (!%p552_p5)
}
 0x1e2   : > { %s556_s14 = scalar_lea.hbm %s730_s9, 128  ;;  %s560_s24 = scalar_lea.hbm %s781_s4, 256 }
 0x1e3   : > { %p557_p6 = scmp.ne.s32.totalorder %s730_s9, %s556_s14  ;;  %p561_p10 = scmp.lt.u32.totalorder %s730_s9, %s781_s4 }
 0x1e4   : > { %p562_p11 = scmp.lt.u32.totalorder %s560_s24, %s556_s14  ;;  %p564_p13 = scmp.lt.u32.totalorder %s556_s14, %s730_s9 }
 0x1e5   : > { %p558_p7 = pnand %p557_p6, %p696_p4 }
 0x1e6   : > { %p563_p12 = por %p562_p11, %p561_p10 }
 0x1e7   : > { %p559_p9 = pneg %p558_p7 }
 0x1e8   : > { %p565_p0 = por %p564_p13, %p563_p12 }
 0x1ea   : > { %p566_p1 = pnand %p565_p0, %p559_p9 }
 0x1ec   : > { %569 = shalt.err (!%p566_p1)
}
 0x1ed   : > { %477 = dma.vmem_to_hbm [thread:$0]  (%p696_p4), %s732_s6, 128, %s730_s9, %s349_s10  }
 0x1ee PF: > { %p483_p2 = scmp.ge.s32.totalorder %s620_s20, 2  ;;  %s375_s30 = sand.u32 1, %s600_s15  }
 0x1ef   : > { %s376_s5 = scalar_lea.sflag [#allocation3], %s375_s30 }
 0x1f0   : > { %p480_p3 = pnand %p483_p2, %p703_p8 }
 0x1f2   : > { %595 = dma.done.wait (!%p480_p3), %s376_s5, 128  }
 0x1f3   : > { %597 = vsyncadd (!%p480_p3), %s376_s5, 4294967168  ;;  %s17_s20 = sadd.s32 1, %s620_s20   ;;  %s784_s15 = smov %s604_s16 }
 0x1f4   : > { %p14_p5 = scmp.ge.s32.totalorder %s17_s20, 4   ;;  %s785_s16 = smov %s608_s17 }
 0x1f5   : > { %s786_s17 = smov %s709_s28  ;;  %s787_s18 = smov %s616_s19 }
 0x1f6   : > { %s788_s19 = smov %s790_s23  ;;  %16 = sbr.rel (!%p14_p5) target bundleno = 4 (0x4), region = 74 }
 0x1fd   :  { %381 = vsyncpa [#allocation3], 1 }
 0x1fe   :  { %383 = vsyncpa [#allocation3 + $0x1], 1 }

</bundles_post_ra>
